<compile_context>
chip_gen: v6e
topology: v6e:2x2x1
jax: 0.10.0
libtpu: 0.0.40
codegen_flags: <defaults>
</compile_context>

<pallas_src>
import numpy as np
import jax
import jax.numpy as jnp
from jax.experimental import pallas as pl
from jax.experimental.pallas import tpu as pltpu


def _round_up(x, m):
    return ((x + m - 1) // m) * m


def _cdiv(a, b):
    return -(-a // b)


# -----------------------------------------------------------------------------
# Kernel: one grid step == one tile of `tb` batch rows.  The 7 channels are
# folded into the lane axis via block-diagonal weights (built once on the JAX
# side), and the two activation-free encoder Linears are algebraically fused,
# so the whole forward is two MXU matmuls per row tile.
# -----------------------------------------------------------------------------
def _joint_embedding_kernel(x_ref, w12_ref, b12_ref, wd_ref, bd_ref,
                            enc_ref, dec_ref):
    # Fused encoder:  enc = x @ (W1_raw @ W2) + ((theta @ W1_theta + b1) @ W2 + b2)
    enc = jnp.dot(x_ref[...], w12_ref[...],
                  preferred_element_type=jnp.float32) + b12_ref[...]
    enc_ref[...] = enc.astype(enc_ref.dtype)                     # (tb, enc_pad)
    # Per-channel decoder as one block-diagonal matmul.
    dec = jnp.dot(enc.astype(wd_ref.dtype), wd_ref[...],
                  preferred_element_type=jnp.float32) + bd_ref[...]
    dec_ref[...] = dec.astype(dec_ref.dtype)                     # (tb, 7*Out)


# -----------------------------------------------------------------------------
# One-time parameter packing (hoist out of the per-forward path).
# -----------------------------------------------------------------------------
def prepare_joint_embedding_params(params, *, compute_dtype=jnp.float32):
    theta = jnp.asarray(params["theta"], jnp.float32)   # (7, T)
    w1 = jnp.asarray(params["w1"], jnp.float32)         # (raw+T, H)
    b1 = jnp.asarray(params["b1"], jnp.float32)         # (1, H)
    w2 = jnp.asarray(params["w2"], jnp.float32)         # (H, Bot)
    b2 = jnp.asarray(params["b2"], jnp.float32)         # (1, Bot)
    wd = jnp.asarray(params["wd"], jnp.float32)         # (7, Bot, Out)
    bd = jnp.asarray(params["bd"], jnp.float32)         # (7, Out)

    C, T = theta.shape
    raw = w1.shape[0] - T
    Bot = w2.shape[1]
    Out = wd.shape[2]

    w1_raw, w1_theta = w1[:raw], w1[raw:]
    # Encoder fusion (no nonlinearity between the two Linears).
    w12 = w1_raw @ w2                                    # (raw, Bot)
    b12 = (theta @ w1_theta + b1) @ w2 + b2              # (C, Bot)

    # Fold the C channels into the lane axis via block-diagonal weights.
    w12_bd = jax.scipy.linalg.block_diag(*([w12] * C))                # (C*raw, C*Bot)
    b12_bd = b12.reshape(1, C * Bot)
    wd_bd = jax.scipy.linalg.block_diag(*[wd[c] for c in range(C)])   # (C*Bot, C*Out)
    bd_bd = bd.reshape(1, C * Out)

    # Pad the encoded lane width (112 -> 128) so its stores are unmasked vst
    # (v5e has only one vector-store slot).  Decoded (168) is NOT padded.
    enc_cols = C * Bot
    enc_pad = _round_up(enc_cols, 128)
    if enc_pad - enc_cols > max(enc_cols // 4, 8):       # skip if too wasteful
        enc_pad = enc_cols
    if enc_pad != enc_cols:
        pad = enc_pad - enc_cols
        w12_bd = jnp.pad(w12_bd, ((0, 0), (0, pad)))
        b12_bd = jnp.pad(b12_bd, ((0, 0), (0, pad)))
        wd_bd = jnp.pad(wd_bd, ((0, pad), (0, 0)))

    return {
        "w12_bd": w12_bd.astype(compute_dtype),
        "b12_bd": b12_bd.astype(jnp.float32),            # biases stay f32
        "wd_bd": wd_bd.astype(compute_dtype),
        "bd_bd": bd_bd.astype(jnp.float32),
        "channels": int(C),
        "bottleneck": int(Bot),
        "output_size": int(Out),
    }


def _choose_row_tile(batch, block_rows, min_tiles, sublane):
    """Row tile: multiple of `sublane`, <= block_rows, >= min_tiles tiles when
    possible, and minimal zero-row padding."""
    n_tiles = max(min_tiles, _cdiv(max(batch, 1), block_rows))
    tb = _round_up(_cdiv(max(batch, 1), n_tiles), sublane)
    tb = max(sublane, min(tb, _round_up(block_rows, sublane)))
    padded = _round_up(max(batch, 1), tb)
    return tb, padded


# -----------------------------------------------------------------------------
# Forward (per-call path): only the streamed pallas_call + thin reshapes.
# -----------------------------------------------------------------------------
def joint_embedding_forward(inputs, packed, *, block_rows=4096, min_row_tiles=4):
    """inputs: (B, 7, input_size - theta_size) float.  `packed` from
    prepare_joint_embedding_params (call it once per parameter set)."""
    w12_bd, b12_bd = packed["w12_bd"], packed["b12_bd"]
    wd_bd, bd_bd = packed["wd_bd"], packed["bd_bd"]
    C, Bot, Out = packed["channels"], packed["bottleneck"], packed["output_size"]

    B, C_in, raw = inputs.shape
    assert C_in == C
    raw7 = C * raw
    enc_cols = C * Bot
    enc_pad = w12_bd.shape[1]
    out7 = wd_bd.shape[1]
    assert w12_bd.shape[0] == raw7 and out7 == C * Out

    compute_dtype = w12_bd.dtype
    itemsize = jnp.dtype(compute_dtype).itemsize
    sublane = {4: 8, 2: 16, 1: 32}.get(itemsize, 8)

    # Channels folded into the lane axis; cast to compute dtype (bf16 halves
    # streamed input bytes; accumulation stays f32 in the kernel).
    x2 = inputs.reshape(B, raw7).astype(compute_dtype)

    tb, Bp = _choose_row_tile(B, block_rows, min_row_tiles, sublane)
    if Bp != B:
        x2 = jnp.pad(x2, ((0, Bp - B), (0, 0)))
    n_tiles = Bp // tb

    grid_spec = pltpu.PrefetchScalarGridSpec(
        num_scalar_prefetch=0,
        grid=(n_tiles,),
        in_specs=[
            pl.BlockSpec((tb, raw7), lambda i: (i, 0)),        # x tile (streamed)
            pl.BlockSpec((raw7, enc_pad), lambda i: (0, 0)),   # fused W12 (resident)
            pl.BlockSpec((1, enc_pad), lambda i: (0, 0)),      # theta-folded bias
            pl.BlockSpec((enc_pad, out7), lambda i: (0, 0)),   # decoder block-diag
            pl.BlockSpec((1, out7), lambda i: (0, 0)),         # decoder bias
        ],
        out_specs=[
            pl.BlockSpec((tb, enc_pad), lambda i: (i, 0)),     # encoded tile
            pl.BlockSpec((tb, out7), lambda i: (i, 0)),        # decoded tile
        ],
    )

    flops = 2 * Bp * (raw7 * enc_pad + enc_pad * out7)
    weight_bytes = (w12_bd.size + wd_bd.size) * itemsize + (b12_bd.size + bd_bd.size) * 4
    bytes_accessed = int(Bp * raw7 * itemsize + Bp * (enc_pad + out7) * 4 + weight_bytes)

    # Raise the scoped VMEM limit only if the chosen tile actually needs it
    # (default 32 MiB; keep headroom for v7x's 64 MiB physical VMEM).
    vmem_need = int(2 * tb * (raw7 * itemsize + (enc_pad + out7) * 4)
                    + weight_bytes + (1 << 20))
    cp_kwargs = dict(dimension_semantics=("parallel",))
    if vmem_need > 32 * 1024 * 1024:
        cp_kwargs["vmem_limit_bytes"] = vmem_need

    encoded2, decoded2 = pl.pallas_call(
        _joint_embedding_kernel,
        out_shape=(
            jax.ShapeDtypeStruct((Bp, enc_pad), jnp.float32),
            jax.ShapeDtypeStruct((Bp, out7), jnp.float32),
        ),
        grid_spec=grid_spec,
        compiler_params=pltpu.CompilerParams(**cp_kwargs),
        cost_estimate=pl.CostEstimate(
            flops=int(flops), transcendentals=0, bytes_accessed=bytes_accessed),
    )(x2, w12_bd, b12_bd, wd_bd, bd_bd)

    encoded = encoded2[:B, :enc_cols].reshape(B, C, Bot)
    decoded = decoded2[:B].reshape(B, C, Out)
    return encoded, decoded


def joint_embedding_apply(inputs, params, *, compute_dtype=jnp.float32, **kw):
    """Convenience wrapper: pack params (should be cached by callers) + forward."""
    packed = prepare_joint_embedding_params(params, compute_dtype=compute_dtype)
    return joint_embedding_forward(inputs, packed, **kw)


# -----------------------------------------------------------------------------
# Test helpers
# -----------------------------------------------------------------------------
def make_params(key, input_size, encoder_h, bottleneck_size, output_size, theta_size=32):
    k0, k1, k2, k3, k4, k5, k6 = jax.random.split(key, 7)
    scale = 0.1
    return {
        # NOTE: the PyTorch module initializes theta to zeros; small random values
        # are used here so the theta-folding path is actually exercised.
        "theta": scale * jax.random.normal(k0, (7, theta_size), jnp.float32),
        "w1": scale * jax.random.normal(k1, (input_size, encoder_h), jnp.float32),
        "b1": scale * jax.random.normal(k2, (1, encoder_h), jnp.float32),
        "w2": scale * jax.random.normal(k3, (encoder_h, bottleneck_size), jnp.float32),
        "b2": scale * jax.random.normal(k4, (1, bottleneck_size), jnp.float32),
        "wd": scale * jax.random.normal(k5, (7, bottleneck_size, output_size), jnp.float32),
        "bd": scale * jax.random.normal(k6, (7, output_size), jnp.float32),
    }


def _reference_forward(inputs, params):
    """NumPy float64 reference of the original (unfused) forward."""
    x = np.asarray(inputs, np.float64)
    theta = np.asarray(params["theta"], np.float64)
    w1, b1 = np.asarray(params["w1"], np.float64), np.asarray(params["b1"], np.float64)
    w2, b2 = np.asarray(params["w2"], np.float64), np.asarray(params["b2"], np.float64)
    wd, bd = np.asarray(params["wd"], np.float64), np.asarray(params["bd"], np.float64)
    B = x.shape[0]
    theta_mod = np.broadcast_to(theta[None], (B,) + theta.shape)
    xc = np.concatenate([x, theta_mod], axis=2)
    h = xc @ w1 + b1
    enc = h @ w2 + b2
    dec = np.einsum("bcf,cfo->bco", enc, wd) + bd[None]
    return enc, dec


if __name__ == "__main__":
    # Small shapes consistent with the module:
    #   theta_size=32, raw input features 16 -> input_size = 48, 7 channels.
    theta_size = 32
    raw_feat = 16
    input_size = raw_feat + theta_size   # 48
    encoder_h = 32
    bottleneck_size = 16
    output_size = 24

    key = jax.random.PRNGKey(0)
    kx1, kx2, kp = jax.random.split(key, 3)
    params = make_params(kp, input_size, encoder_h, bottleneck_size, output_size, theta_size)

    # ---- f32 path, tiny batch (single tile + row padding) -------------------
    B = 2
    inputs = jax.random.normal(kx1, (B, 7, raw_feat), jnp.float32)
    packed_f32 = prepare_joint_embedding_params(params, compute_dtype=jnp.float32)
    enc, dec = joint_embedding_forward(inputs, packed_f32)
    jax.block_until_ready((enc, dec))
    enc_ref, dec_ref = _reference_forward(inputs, params)
    # Tolerances account for the W1@W2 reassociation and MXU pass precision.
    np.testing.assert_allclose(np.asarray(enc), enc_ref, rtol=5e-3, atol=2e-3)
    np.testing.assert_allclose(np.asarray(dec), dec_ref, rtol=5e-3, atol=2e-3)

    # ---- bf16 operands (half HBM traffic / bf16 MXU), multi-tile grid -------
    B2 = 37
    inputs2 = jax.random.normal(kx2, (B2, 7, raw_feat), jnp.float32)
    packed_bf16 = prepare_joint_embedding_params(params, compute_dtype=jnp.bfloat16)
    enc2, dec2 = joint_embedding_forward(inputs2, packed_bf16,
                                         block_rows=4096, min_row_tiles=4)
    jax.block_until_ready((enc2, dec2))
    enc2_ref, dec2_ref = _reference_forward(inputs2, params)
    np.testing.assert_allclose(np.asarray(enc2), enc2_ref, rtol=4e-2, atol=1e-2)
    np.testing.assert_allclose(np.asarray(dec2), dec2_ref, rtol=4e-2, atol=1e-2)

    print("KERNEL_OK")
</pallas_src>

<mosaic_0001>
module attributes {stable_mosaic.version = 11 : i64} {
  func.func @_joint_embedding_kernel(%arg0: i32, %arg1: memref<8x112xf32, #tpu.memory_space<vmem>>, %arg2: memref<112x128xf32, #tpu.memory_space<vmem>>, %arg3: memref<1x128xf32, #tpu.memory_space<vmem>>, %arg4: memref<128x168xf32, #tpu.memory_space<vmem>>, %arg5: memref<1x168xf32, #tpu.memory_space<vmem>>, %arg6: memref<8x128xf32, #tpu.memory_space<vmem>>, %arg7: memref<8x168xf32, #tpu.memory_space<vmem>>) attributes {dimension_semantics = [#tpu.dimension_semantics<parallel>], iteration_bounds = array<i64: 1>, scalar_prefetch = 0 : i64, scratch_operands = 0 : i64, tpu.core_type = #tpu.core_type<tc>, window_params = [{transform_indices = @transform_0, window_bounds = array<i64: 8, 112>}, {pipeline_mode = #tpu.pipeline_mode<synchronous>, transform_indices = @transform_1, window_bounds = array<i64: 112, 128>}, {pipeline_mode = #tpu.pipeline_mode<synchronous>, transform_indices = @transform_2, window_bounds = array<i64: 1, 128>}, {pipeline_mode = #tpu.pipeline_mode<synchronous>, transform_indices = @transform_3, window_bounds = array<i64: 128, 168>}, {pipeline_mode = #tpu.pipeline_mode<synchronous>, transform_indices = @transform_4, window_bounds = array<i64: 1, 168>}, {transform_indices = @transform_5, window_bounds = array<i64: 8, 128>}, {transform_indices = @transform_6, window_bounds = array<i64: 8, 168>}]} {
    %c0 = arith.constant 0 : index
    %c0_0 = arith.constant 0 : index
    %0 = vector.load %arg1[%c0, %c0_0] : memref<8x112xf32, #tpu.memory_space<vmem>>, vector<8x112xf32>
    %c0_1 = arith.constant 0 : index
    %c0_2 = arith.constant 0 : index
    %1 = vector.load %arg2[%c0_1, %c0_2] : memref<112x128xf32, #tpu.memory_space<vmem>>, vector<112x128xf32>
    %cst = arith.constant dense<0.000000e+00> : vector<8x128xf32>
    %2 = tpu.matmul %0, %1, %cst {dimension_numbers = #tpu.dot_dimension_numbers<[1], [0], [0], [1], [0, 0, 1, 1], [], []>} : vector<8x112xf32>, vector<112x128xf32>, vector<8x128xf32> -> vector<8x128xf32>
    %c0_3 = arith.constant 0 : index
    %c0_4 = arith.constant 0 : index
    %3 = vector.load %arg3[%c0_3, %c0_4] : memref<1x128xf32, #tpu.memory_space<vmem>>, vector<1x128xf32>
    %4 = vector.broadcast %3 : vector<1x128xf32> to vector<8x128xf32>
    %5 = arith.addf %2, %4 : vector<8x128xf32>
    %c0_5 = arith.constant 0 : index
    %c0_6 = arith.constant 0 : index
    %6 = vector.load %arg6[%c0_5, %c0_6] : memref<8x128xf32, #tpu.memory_space<vmem>>, vector<8x128xf32>
    tpu.vector_store %arg6[%c0_5, %c0_6], %5 {strides = array<i32>} : memref<8x128xf32, #tpu.memory_space<vmem>>, vector<8x128xf32>,
    %c0_7 = arith.constant 0 : index
    %c0_8 = arith.constant 0 : index
    %7 = vector.load %arg4[%c0_7, %c0_8] : memref<128x168xf32, #tpu.memory_space<vmem>>, vector<128x168xf32>
    %cst_9 = arith.constant dense<0.000000e+00> : vector<8x168xf32>
    %8 = tpu.matmul %5, %7, %cst_9 {dimension_numbers = #tpu.dot_dimension_numbers<[1], [0], [0], [1], [0, 0, 1, 1], [], []>} : vector<8x128xf32>, vector<128x168xf32>, vector<8x168xf32> -> vector<8x168xf32>
    %c0_10 = arith.constant 0 : index
    %c0_11 = arith.constant 0 : index
    %9 = vector.load %arg5[%c0_10, %c0_11] : memref<1x168xf32, #tpu.memory_space<vmem>>, vector<1x168xf32>
    %10 = vector.broadcast %9 : vector<1x168xf32> to vector<8x168xf32>
    %11 = arith.addf %8, %10 : vector<8x168xf32>
    %c0_12 = arith.constant 0 : index
    %c0_13 = arith.constant 0 : index
    %12 = vector.load %arg7[%c0_12, %c0_13] : memref<8x168xf32, #tpu.memory_space<vmem>>, vector<8x168xf32>
    tpu.vector_store %arg7[%c0_12, %c0_13], %11 {strides = array<i32>} : memref<8x168xf32, #tpu.memory_space<vmem>>, vector<8x168xf32>,
    return
  }
  func.func @transform_0(%arg0: i32) -> (i32, i32) {
    %c0_i32 = arith.constant 0 : i32
    %c0_i32_0 = arith.constant 0 : i32
    return %arg0, %c0_i32 : i32, i32
  }
  func.func @transform_1(%arg0: i32) -> (i32, i32) {
    %c0_i32 = arith.constant 0 : i32
    %c0_i32_0 = arith.constant 0 : i32
    %c0_i32_1 = arith.constant 0 : i32
    return %c0_i32, %c0_i32_0 : i32, i32
  }
  func.func @transform_2(%arg0: i32) -> (i32, i32) {
    %c0_i32 = arith.constant 0 : i32
    %c0_i32_0 = arith.constant 0 : i32
    %c0_i32_1 = arith.constant 0 : i32
    return %c0_i32, %c0_i32_0 : i32, i32
  }
  func.func @transform_3(%arg0: i32) -> (i32, i32) {
    %c0_i32 = arith.constant 0 : i32
    %c0_i32_0 = arith.constant 0 : i32
    %c0_i32_1 = arith.constant 0 : i32
    return %c0_i32, %c0_i32_0 : i32, i32
  }
  func.func @transform_4(%arg0: i32) -> (i32, i32) {
    %c0_i32 = arith.constant 0 : i32
    %c0_i32_0 = arith.constant 0 : i32
    %c0_i32_1 = arith.constant 0 : i32
    return %c0_i32, %c0_i32_0 : i32, i32
  }
  func.func @transform_5(%arg0: i32) -> (i32, i32) {
    %c0_i32 = arith.constant 0 : i32
    %c0_i32_0 = arith.constant 0 : i32
    return %arg0, %c0_i32 : i32, i32
  }
  func.func @transform_6(%arg0: i32) -> (i32, i32) {
    %c0_i32 = arith.constant 0 : i32
    %c0_i32_0 = arith.constant 0 : i32
    return %arg0, %c0_i32 : i32, i32
  }
}

</mosaic_0001>

<bundles_post_ra>
// kernel: tpu_custom_call.1
= control target key start
LH: loop header
LB: loop body
LE: loop exit
PB: predicated region body
PF: predicated region fallthrough
CT: control target
= control target key end

     0   :  { %12 = vsyncpa [#allocation3], 0  ;;  %v363_v1 = vmov 0.0   ;;  %vm364_vm0 = vmmov 0   ;;  %s571_s0 = inlined_call_operand.vmem [shape: f32[8,112], index: 0, kind: input, shape index: {}]   ;;  %s572_s1 = inlined_call_operand.vmem [shape: f32[112,128], index: 1, kind: input, shape index: {}]   ;;  %s573_s2 = inlined_call_operand.vmem [shape: f32[1,128], index: 2, kind: input, shape index: {}]   ;;  %s574_s3 = inlined_call_operand.vmem [shape: f32[128,168], index: 3, kind: input, shape index: {}]   ;;  %s575_s4 = inlined_call_operand.vmem [shape: f32[1,168], index: 4, kind: input, shape index: {}]   ;;  %s576_s5 = inlined_call_operand.hbm [shape: f32[8,128], index: 5, kind: output, shape index: {0}]   ;;  %s577_s6 = inlined_call_operand.hbm [shape: f32[8,168], index: 6, kind: output, shape index: {1}]  }
   0x1   :  { %v38_v0 = vld [vmem:[%s572_s1 + $0x68] sm:$0xff]  ;;  %284 = vmatprep.subr.mxu0 %v363_v1  ;;  %v37_v2 = vld [vmem:[%s572_s1 + $0x60] sm:$0xff]  ;;  %312 = vmatprep.mubr.msk.f32.mxu0 %vm364_vm0, %v363_v1  ;;  %v36_v3 = vld [vmem:[%s572_s1 + $0x58] sm:$0xff] }
   0x2   :  { %285 = vmatpush3.msra.mxu0 %v38_v0  ;;  %229 = vmatprep.mubr.f32.mxu1 %v363_v1  ;;  %v35_v4 = vld [vmem:[%s572_s1 + $0x50] sm:$0xff]  ;;  %v152_v5 = vld [vmem:[%s574_s3 + $0xf8] sm:$0xff]  ;;  %v150_v7 = vld [vmem:[%s574_s3 + $0xe8] sm:$0xff] }
   0x3   :  { %286 = vmatprep.subr.mxu0 %v363_v1  ;;  %v151_v6 = vld [vmem:[%s574_s3 + $0xf0] sm:$0xff]  ;;  %165 = vmatprep.subr.mxu1 %v152_v5  ;;  %v149_v8 = vld [vmem:[%s574_s3 + $0xe0] sm:$0xff]  ;;  %v34_v9 = vld [vmem:[%s572_s1 + $0x48] sm:$0xff] }
   0x4   :  { %287 = vmatpush3.msra.mxu0 %v37_v2  ;;  %166 = vmatpush1.msra.mxu1 %v151_v6  ;;  %v148_v10 = vld [vmem:[%s574_s3 + $0xd8] sm:$0xff]  ;;  %v147_v11 = vld [vmem:[%s574_s3 + $0xd0] sm:$0xff]  ;;  %v33_v12 = vld [vmem:[%s572_s1 + $0x40] sm:$0xff] }
   0x5   :  { %288 = vmatprep.subr.mxu0 %v363_v1  ;;  %167 = vmatprep.subr.mxu1 %v150_v7  ;;  %v146_v13 = vld [vmem:[%s574_s3 + $0xc8] sm:$0xff]  ;;  %v145_v14 = vld [vmem:[%s574_s3 + $0xc0] sm:$0xff]  ;;  %v32_v15 = vld [vmem:[%s572_s1 + $0x38] sm:$0xff] }
   0x6   :  { %289 = vmatpush3.msra.mxu0 %v36_v3  ;;  %168 = vmatpush1.msra.mxu1 %v149_v8  ;;  %v144_v16 = vld [vmem:[%s574_s3 + $0xb8] sm:$0xff]  ;;  %v143_v17 = vld [vmem:[%s574_s3 + $0xb0] sm:$0xff]  ;;  %v142_v19 = vld [vmem:[%s574_s3 + $0xa8] sm:$0xff] }
   0x7   :  { %290 = vmatprep.subr.mxu0 %v363_v1  ;;  %169 = vmatprep.subr.mxu1 %v148_v10  ;;  %v31_v18 = vld [vmem:[%s572_s1 + $0x30] sm:$0xff]  ;;  %v141_v20 = vld [vmem:[%s574_s3 + $0xa0] sm:$0xff]  ;;  %v30_v21 = vld [vmem:[%s572_s1 + $0x28] sm:$0xff] }
   0x8   :  { %291 = vmatpush3.msra.mxu0 %v35_v4  ;;  %170 = vmatpush1.msra.mxu1 %v147_v11  ;;  %v140_v22 = vld [vmem:[%s574_s3 + $0x98] sm:$0xff] }
   0x9   :  { %292 = vmatprep.subr.mxu0 %v363_v1  ;;  %171 = vmatprep.subr.mxu1 %v146_v13 }
   0xa   :  { %293 = vmatpush3.msra.mxu0 %v34_v9  ;;  %172 = vmatpush1.msra.mxu1 %v145_v14 }
   0xb   :  { %294 = vmatprep.subr.mxu0 %v363_v1  ;;  %173 = vmatprep.subr.mxu1 %v144_v16 }
   0xc   :  { %295 = vmatpush3.msra.mxu0 %v33_v12  ;;  %174 = vmatpush1.msra.mxu1 %v143_v17 }
   0xd   :  { %296 = vmatprep.subr.mxu0 %v363_v1 }
   0xe   :  { %297 = vmatpush3.msra.mxu0 %v32_v15 }
   0xf   :  { %298 = vmatprep.subr.mxu0 %v363_v1 }
  0x10   :  { %13 = vsyncpa [#allocation5], 0  ;;  %299 = vmatpush3.msra.mxu0 %v31_v18  ;;  %175 = vmatprep.subr.mxu1 %v142_v19  ;;  %v139_v23 = vld [vmem:[%s574_s3 + $0x90] sm:$0xff]  ;;  %v29_v24 = vld [vmem:[%s572_s1 + $0x20] sm:$0xff]  ;;  %vm46_vm1 = vcmask 916480   ;;  %s365_s19 = smov [#allocation2]  }
  0x11   :  { %300 = vmatprep.subr.mxu0 %v363_v1  ;;  %176 = vmatpush1.msra.mxu1 %v141_v20  ;;  %v138_v25 = vld [vmem:[%s574_s3 + $0x88] sm:$0xff]  ;;  %v137_v26 = vld [vmem:[%s574_s3 + $0x80] sm:$0xff]  ;;  %v28_v27 = vld [vmem:[%s572_s1 + $0x18] sm:$0xff]  ;;  %s245_s20 = sshll.u32 %s365_s19, 4  ;;  %s246_s20 = int_to_ptr.vmem [resolvable:$true] %s245_s20 }
  0x12   :  { %301 = vmatpush3.msra.mxu0 %v30_v21  ;;  %177 = vmatprep.subr.mxu1 %v140_v22  ;;  %v136_v28 = vld [vmem:[%s574_s3 + $0x78] sm:$0xff]  ;;  %v135_v29 = vld [vmem:[%s574_s3 + $0x70] sm:$0xff]  ;;  %v134_v31 = vld [vmem:[%s574_s3 + $0x68] sm:$0xff]  ;;  %s319_s21 = scalar_lea.vmem %s246_s20, 128  ;;  %p324_p1 = scmp.lt.s32.totalorder %s246_s20, %s246_s20 }
  0x13   :  { %302 = vmatprep.subr.mxu0 %v363_v1  ;;  %178 = vmatpush1.msra.mxu1 %v139_v23  ;;  %v27_v30 = vld [vmem:[%s572_s1 + $0x10] sm:$0xff]  ;;  %v133_v32 = vld [vmem:[%s574_s3 + $0x60] sm:$0xff]  ;;  %v26_v33 = vld [vmem:[%s572_s1 + $0x8] sm:$0xff]  ;;  %p320_p0 = scmp.ne.s32.totalorder %s246_s20, %s319_s21  ;;  %p325_p2 = scmp.lt.s32.totalorder %s319_s21, %s319_s21 }
  0x14   :  { %303 = vmatpush3.msra.mxu0 %v29_v24  ;;  %179 = vmatprep.subr.mxu1 %v138_v25  ;;  %v132_v34 = vld [vmem:[%s574_s3 + $0x58] sm:$0xff]  ;;  %v131_v35 = vld [vmem:[%s574_s3 + $0x50] sm:$0xff]  ;;  %v25_v36 = vld [vmem:[%s572_s1] sm:$0xff] }
  0x15   :  { %304 = vmatprep.subr.mxu0 %v363_v1  ;;  %180 = vmatpush1.msra.mxu1 %v137_v26  ;;  %v130_v37 = vld [vmem:[%s574_s3 + $0x48] sm:$0xff]  ;;  %v24_v38 = vld [vmem:[%s571_s0] sm:$0xff]  ;;  %v128_v40 = vld [vmem:[%s574_s3 + $0x38] sm:$0xff]  ;;  %p326_p3 = por %p325_p2, %p324_p1 }
  0x16   :  { %305 = vmatpush3.msra.mxu0 %v28_v27  ;;  %181 = vmatprep.subr.mxu1 %v136_v28  ;;  %v129_v39 = vld [vmem:[%s574_s3 + $0x40] sm:$0xff]  ;;  %v127_v41 = vld [vmem:[%s574_s3 + $0x30] sm:$0xff]  ;;  %v126_v42 = vld [vmem:[%s574_s3 + $0x28] sm:$0xff] }
  0x17   :  { %306 = vmatprep.subr.mxu0 %v363_v1  ;;  %182 = vmatpush1.msra.mxu1 %v135_v29  ;;  %v125_v43 = vld [vmem:[%s574_s3 + $0x20] sm:$0xff]  ;;  %v124_v44 = vld [vmem:[%s574_s3 + $0x18] sm:$0xff]  ;;  %v123_v45 = vld [vmem:[%s574_s3 + $0x10] sm:$0xff]  ;;  %p327_p4 = pnand %p326_p3, %p320_p0 }
  0x18   :  { %307 = vmatpush3.msra.mxu0 %v27_v30  ;;  %183 = vmatprep.subr.mxu1 %v134_v31  ;;  %v122_v46 = vld [vmem:[%s574_s3 + $0x8] sm:$0xff]  ;;  %v121_v47 = vld [vmem:[%s574_s3] sm:$0xff] }
  0x19   :  { %308 = vmatprep.subr.mxu0 %v363_v1  ;;  %184 = vmatpush1.msra.mxu1 %v133_v32  ;;  %v267_v48 = vld [vmem:[%s573_s2] ss:$0 sm:$0xff] }
  0x1a   :  { %309 = vmatpush3.msra.mxu0 %v26_v33  ;;  %185 = vmatprep.subr.mxu1 %v132_v34 }
  0x1b   :  { %310 = vmatprep.subr.mxu0 %v363_v1  ;;  %186 = vmatpush1.msra.mxu1 %v131_v35 }
  0x1c   :  { %311 = vmatpush3.msra.mxu0 %v25_v36  ;;  %187 = vmatprep.subr.mxu1 %v130_v37 }
  0x1d   :  { %313 = vmatmul.mubr.msk.f32.vlgmr.msra.gmra.mxu0 %vm46_vm1, %v24_v38  ;;  %188 = vmatpush1.msra.mxu1 %v129_v39 }
  0x1e   :  { %189 = vmatprep.subr.mxu1 %v128_v40 }
  0x1f   :  { %190 = vmatpush1.msra.mxu1 %v127_v41 }
  0x20   :  { %191 = vmatprep.subr.mxu1 %v126_v42 }
  0x21   :  { %192 = vmatpush1.msra.mxu1 %v125_v43 }
  0x22   :  { %193 = vmatprep.subr.mxu1 %v124_v44 }
  0x23   :  { %194 = vmatpush1.msra.mxu1 %v123_v45 }
  0x24   :  { %195 = vmatprep.subr.mxu1 %v122_v46 }
  0x25   :  { %196 = vmatpush1.msra.mxu1 %v121_v47 }
  0xdd   :  { %v116_v49 = vpop.f32.mrf.mxu0 }
  0xde   :  { %v117_v50 = vadd.f32 %v267_v48, %v116_v49 }
  0xdf   :  { %v314_v51 = vpop.f32.mrf.mxu0 }
  0xe0   :  { %120 = vst [vmem:[#allocation2] sm:$0xff] %v117_v50  ;;  %230 = vmatmul.mubr.f32.vlgmr.msra.gmra.mxu1 %v117_v50 }
  0xe1   :  { %330 = shalt.err (!%p327_p4)
}
  0xe2   :  { %248 = dma.vmem_to_hbm [thread:$0]  %s246_s20, 128, %s576_s5, [#allocation3]   ;;  %v155_v52 = vlaneseq  ;;  %v153_v55 = vld [vmem:[%s575_s4] sm:$0x3]  ;;  %vm237_vm2 = vcmask 326656  }
  0xe3   :  { %s366_s24 = smov [#allocation4]  }
  0xe4   :  { %v156_v53 = vshrl.u32 %v155_v52, 7  ;;  %s255_s25 = sshll.u32 %s366_s24, 4  ;;  %s256_s25 = int_to_ptr.vmem [resolvable:$true] %s255_s25 }
  0xe5   :  { %s339_s5 = scalar_lea.vmem %s256_s25, 256  ;;  %p344_p6 = scmp.lt.s32.totalorder %s256_s25, %s256_s25 }
  0xe6   :  { %v157_v54 = vsub.s32 0, %v156_v53  ;;  %v161_v56 = vsub.s32 1, %v156_v53  ;;  %p340_p5 = scmp.ne.s32.totalorder %s256_s25, %s339_s5  ;;  %p345_p7 = scmp.lt.s32.totalorder %s339_s5, %s339_s5 }
  0xe8   :  { %v158_v57 = vrot.slane %v153_v55, %v157_v54  ;;  %v162_v58 = vrot.slane %v153_v55, %v161_v56  ;;  %p346_p8 = por %p345_p7, %p344_p6 }
  0xea   :  { %p347_p9 = pnand %p346_p8, %p340_p5 }
 0x1a0   :  { %v231_v59 = vpop.f32.mrf.mxu1 }
 0x1a1   :  { %v232_v60 = vadd.f32 %v231_v59, %v158_v57 }
 0x1a2   :  { %v233_v61 = vpop.f32.mrf.mxu1 }
 0x1a3   :  { %236 = vst [vmem:[#allocation4] sm:$0xff] %v232_v60  ;;  %v234_v62 = vadd.f32 %v233_v61, %v162_v58 }
 0x1a5   :  { %238 = vst.msk [vmem:[#allocation4 + $0x8] sm:$0xff] %vm237_vm2, %v234_v62 }
 0x1a6   :  { %350 = shalt.err (!%p347_p9)
}
 0x1a7   :  { %258 = dma.vmem_to_hbm [thread:$0]  %s256_s25, 256, %s577_s6, [#allocation5]  }
 0x1a8   :  { %359 = dma.done.wait [#allocation3], 128  }
 0x1a9   :  { %360 = vsyncadd [#allocation3], 4294967168 }
 0x1aa   :  { %361 = dma.done.wait [#allocation5], 256  }
 0x1ab   :  { %362 = vsyncadd [#allocation5], 4294967040 }
 0x1ac   :  { %265 = vsyncpa [#allocation3], 1 }
 0x1ad   :  { %266 = vsyncpa [#allocation5], 1 }

</bundles_post_ra>
